<compile_context>
chip_gen: v7x
topology: tpu7x:2x2x1
jax: 0.10.0
libtpu: 0.0.40
codegen_flags: <defaults>
</compile_context>

<pallas_src>
import jax
import jax.numpy as jnp
from jax.experimental import pallas as pl
from jax.experimental.pallas import tpu as pltpu

LN_EPS = 1e-5  # torch.nn.LayerNorm default


def _round_up(x, m):
    return ((x + m - 1) // m) * m


def _single_token_classifier_kernel(x_ref, gamma_ref, beta_ref, w_ref, b_ref, o_ref):
    # One tile of token-0 rows: x_ref is (TM, D). LayerNorm over the last axis,
    # then (TM, D) @ (D, C) on the MXU, plus bias.
    x = x_ref[...].astype(jnp.float32)
    gamma = gamma_ref[...].astype(jnp.float32)   # (1, D)
    beta = beta_ref[...].astype(jnp.float32)     # (1, D)
    w = w_ref[...].astype(jnp.float32)           # (D, C)
    b = b_ref[...].astype(jnp.float32)           # (1, C)

    # Fused one-pass LayerNorm statistics: both reductions read x directly.
    inv_d = jnp.float32(1.0 / x.shape[-1])
    s1 = jnp.sum(x, axis=-1, keepdims=True)
    s2 = jnp.sum(x * x, axis=-1, keepdims=True)
    mean = s1 * inv_d
    var = jnp.maximum(s2 * inv_d - mean * mean, 0.0)   # guard tiny negative rounding
    x_norm = (x - mean) * jax.lax.rsqrt(var + LN_EPS)  # rsqrt -> EUP

    y = x_norm * gamma + beta                          # (TM, D)
    logits = jnp.dot(y, w, preferred_element_type=jnp.float32) + b
    o_ref[...] = logits.astype(o_ref.dtype)


def single_token_classifier(x, gamma, beta, weight, bias, *, tm=None):
    """x: (B, S, D); gamma/beta: (D,); weight: (C, D) (PyTorch nn.Linear layout);
    bias: (C,). Returns logits of shape (B, C) — token 0 only, as in the module."""
    B, S, D = x.shape
    C, D_w = weight.shape
    assert D_w == D, "weight must be (n_classes, d_model)"

    # Only token 0 is ever used by the module; slice it out so the kernel reads
    # just B*D elements instead of B*S*D.
    x0 = x[:, 0, :]                                    # (B, D)

    if tm is None:
        # Conservative double-buffered working-set budget: safe under the v5e 16 MiB
        # default scoped VMEM and well within v7x's 64 MiB physical VMEM.
        budget_bytes = 8 * 1024 * 1024
        bytes_per_row = 2 * (D + C) * 4                # double-buffered f32 x-row + out-row
        tm_cap = max(8, (budget_bytes // bytes_per_row) // 8 * 8)
        tm_cap = min(tm_cap, 1024)                     # measured roofline sweet spot
        tm = min(tm_cap, _round_up(B, 8))
    assert tm >= 8 and tm % 8 == 0, "tm must be a positive multiple of 8 (f32 sublane tiling)"

    # Pad rows so the tile size divides the row count (padded rows are zeros; their
    # garbage logits are sliced off below and cannot affect valid rows).
    M = _round_up(B, tm)
    if M != B:
        x0 = jnp.pad(x0, ((0, M - B), (0, 0)))

    gamma2d = gamma.reshape(1, D)
    beta2d = beta.reshape(1, D)
    w_t = weight.T                                     # (D, C) for the MXU
    bias2d = bias.reshape(1, C)

    grid = (M // tm,)

    out2d = pl.pallas_call(
        _single_token_classifier_kernel,
        out_shape=jax.ShapeDtypeStruct((M, C), x.dtype),
        grid_spec=pltpu.PrefetchScalarGridSpec(
            num_scalar_prefetch=0,
            grid=grid,
            in_specs=[
                pl.BlockSpec((tm, D), lambda i: (i, 0)),   # token-0 rows tile
                pl.BlockSpec((1, D), lambda i: (0, 0)),    # gamma (replicated)
                pl.BlockSpec((1, D), lambda i: (0, 0)),    # beta
                pl.BlockSpec((D, C), lambda i: (0, 0)),    # weight (replicated)
                pl.BlockSpec((1, C), lambda i: (0, 0)),    # bias
            ],
            out_specs=pl.BlockSpec((tm, C), lambda i: (i, 0)),
        ),
        compiler_params=pltpu.CompilerParams(
            dimension_semantics=("parallel",),             # megacore-shardable on v7x
            vmem_limit_bytes=32 * 1024 * 1024,             # headroom; valid on v5e/v6e/v7x
        ),
    )(x0, gamma2d, beta2d, w_t, bias2d)

    return out2d[:B]


def _reference(x, gamma, beta, weight, bias):
    mean = jnp.mean(x, axis=-1, keepdims=True)
    var = jnp.mean((x - mean) ** 2, axis=-1, keepdims=True)
    xn = (x - mean) / jnp.sqrt(var + LN_EPS)
    y = xn * gamma + beta
    y0 = y[:, 0, :]
    return y0 @ weight.T + bias


if __name__ == "__main__":
    # Small shapes consistent with the module: batch=2, seq=8, d_model=32, n_classes=8.
    B, S, D, C = 2, 8, 32, 8

    key = jax.random.PRNGKey(0)
    kx, kg, kb, kw, kbias = jax.random.split(key, 5)

    x = jax.random.normal(kx, (B, S, D), dtype=jnp.float32)
    gamma = 1.0 + 0.01 * jax.random.normal(kg, (D,), dtype=jnp.float32)
    beta = 0.01 * jax.random.normal(kb, (D,), dtype=jnp.float32)
    weight = jax.random.normal(kw, (C, D), dtype=jnp.float32) / jnp.sqrt(D)   # torch (C, D) layout
    bias = 0.1 * jax.random.normal(kbias, (C,), dtype=jnp.float32)

    out = single_token_classifier(x, gamma, beta, weight, bias)
    out = jax.block_until_ready(out)
    ref = _reference(x, gamma, beta, weight, bias)
    assert out.shape == (B, C)
    assert jnp.allclose(out, ref, atol=1e-4, rtol=1e-4), "mismatch vs reference (small)"

    # Second check exercising the tiled, multi-step pipelined grid + row padding path.
    B2, S2 = 300, 4
    kx2 = jax.random.split(key, 6)[5]
    x2 = jax.random.normal(kx2, (B2, S2, D), dtype=jnp.float32)
    out2 = single_token_classifier(x2, gamma, beta, weight, bias, tm=64)  # M=320, grid=5
    out2 = jax.block_until_ready(out2)
    ref2 = _reference(x2, gamma, beta, weight, bias)
    assert out2.shape == (B2, C)
    assert jnp.allclose(out2, ref2, atol=1e-4, rtol=1e-4), "mismatch vs reference (tiled)"

    print("KERNEL_OK")
</pallas_src>

<mosaic_0001>
module attributes {stable_mosaic.version = 11 : i64} {
  func.func @_single_token_classifier_kernel(%arg0: i32, %arg1: memref<8x32xf32, #tpu.memory_space<vmem>>, %arg2: memref<1x32xf32, #tpu.memory_space<vmem>>, %arg3: memref<1x32xf32, #tpu.memory_space<vmem>>, %arg4: memref<32x8xf32, #tpu.memory_space<vmem>>, %arg5: memref<1x8xf32, #tpu.memory_space<vmem>>, %arg6: memref<8x8xf32, #tpu.memory_space<vmem>>) attributes {dimension_semantics = [#tpu.dimension_semantics<parallel>], iteration_bounds = array<i64: 1>, scalar_prefetch = 0 : i64, scratch_operands = 0 : i64, tpu.core_type = #tpu.core_type<tc>, window_params = [{transform_indices = @transform_0, window_bounds = array<i64: 8, 32>}, {pipeline_mode = #tpu.pipeline_mode<synchronous>, transform_indices = @transform_1, window_bounds = array<i64: 1, 32>}, {pipeline_mode = #tpu.pipeline_mode<synchronous>, transform_indices = @transform_2, window_bounds = array<i64: 1, 32>}, {pipeline_mode = #tpu.pipeline_mode<synchronous>, transform_indices = @transform_3, window_bounds = array<i64: 32, 8>}, {pipeline_mode = #tpu.pipeline_mode<synchronous>, transform_indices = @transform_4, window_bounds = array<i64: 1, 8>}, {transform_indices = @transform_5, window_bounds = array<i64: 8, 8>}]} {
    %c0 = arith.constant 0 : index
    %c0_0 = arith.constant 0 : index
    %0 = vector.load %arg1[%c0, %c0_0] : memref<8x32xf32, #tpu.memory_space<vmem>>, vector<8x32xf32>
    %c0_1 = arith.constant 0 : index
    %c0_2 = arith.constant 0 : index
    %1 = vector.load %arg2[%c0_1, %c0_2] : memref<1x32xf32, #tpu.memory_space<vmem>>, vector<1x32xf32>
    %c0_3 = arith.constant 0 : index
    %c0_4 = arith.constant 0 : index
    %2 = vector.load %arg3[%c0_3, %c0_4] : memref<1x32xf32, #tpu.memory_space<vmem>>, vector<1x32xf32>
    %c0_5 = arith.constant 0 : index
    %c0_6 = arith.constant 0 : index
    %3 = vector.load %arg4[%c0_5, %c0_6] : memref<32x8xf32, #tpu.memory_space<vmem>>, vector<32x8xf32>
    %c0_7 = arith.constant 0 : index
    %c0_8 = arith.constant 0 : index
    %4 = vector.load %arg5[%c0_7, %c0_8] : memref<1x8xf32, #tpu.memory_space<vmem>>, vector<1x8xf32>
    %cst = arith.constant dense<0.000000e+00> : vector<8xf32>
    %5 = vector.multi_reduction <add>, %0, %cst [1] : vector<8x32xf32> to vector<8xf32>
    %6 = vector.shape_cast %5 : vector<8xf32> to vector<8x1xf32>
    %7 = arith.mulf %0, %0 : vector<8x32xf32>
    %cst_9 = arith.constant dense<0.000000e+00> : vector<8xf32>
    %8 = vector.multi_reduction <add>, %7, %cst_9 [1] : vector<8x32xf32> to vector<8xf32>
    %9 = vector.shape_cast %8 : vector<8xf32> to vector<8x1xf32>
    %cst_10 = arith.constant 3.125000e-02 : f32
    %10 = vector.broadcast %cst_10 : f32 to vector<8x1xf32>
    %11 = arith.mulf %6, %10 : vector<8x1xf32>
    %cst_11 = arith.constant 3.125000e-02 : f32
    %12 = vector.broadcast %cst_11 : f32 to vector<8x1xf32>
    %13 = arith.mulf %9, %12 : vector<8x1xf32>
    %14 = arith.mulf %11, %11 : vector<8x1xf32>
    %15 = arith.subf %13, %14 : vector<8x1xf32>
    %cst_12 = arith.constant 0.000000e+00 : f32
    %16 = vector.broadcast %cst_12 : f32 to vector<8x1xf32>
    %17 = arith.maximumf %15, %16 : vector<8x1xf32>
    %18 = vector.broadcast %11 : vector<8x1xf32> to vector<8x32xf32>
    %19 = arith.subf %0, %18 : vector<8x32xf32>
    %cst_13 = arith.constant 9.99999974E-6 : f32
    %20 = vector.broadcast %cst_13 : f32 to vector<8x1xf32>
    %21 = arith.addf %17, %20 : vector<8x1xf32>
    %22 = math.rsqrt %21 : vector<8x1xf32>
    %23 = vector.broadcast %22 : vector<8x1xf32> to vector<8x32xf32>
    %24 = arith.mulf %19, %23 : vector<8x32xf32>
    %25 = vector.broadcast %1 : vector<1x32xf32> to vector<8x32xf32>
    %26 = arith.mulf %24, %25 : vector<8x32xf32>
    %27 = vector.broadcast %2 : vector<1x32xf32> to vector<8x32xf32>
    %28 = arith.addf %26, %27 : vector<8x32xf32>
    %cst_14 = arith.constant dense<0.000000e+00> : vector<8x8xf32>
    %29 = tpu.matmul %28, %3, %cst_14 {dimension_numbers = #tpu.dot_dimension_numbers<[1], [0], [0], [1], [0, 0, 1, 1], [], []>} : vector<8x32xf32>, vector<32x8xf32>, vector<8x8xf32> -> vector<8x8xf32>
    %30 = vector.broadcast %4 : vector<1x8xf32> to vector<8x8xf32>
    %31 = arith.addf %29, %30 : vector<8x8xf32>
    %c0_15 = arith.constant 0 : index
    %c0_16 = arith.constant 0 : index
    %32 = vector.load %arg6[%c0_15, %c0_16] : memref<8x8xf32, #tpu.memory_space<vmem>>, vector<8x8xf32>
    tpu.vector_store %arg6[%c0_15, %c0_16], %31 {strides = array<i32>} : memref<8x8xf32, #tpu.memory_space<vmem>>, vector<8x8xf32>,
    return
  }
  func.func @transform_0(%arg0: i32) -> (i32, i32) {
    %c0_i32 = arith.constant 0 : i32
    %c0_i32_0 = arith.constant 0 : i32
    return %arg0, %c0_i32 : i32, i32
  }
  func.func @transform_1(%arg0: i32) -> (i32, i32) {
    %c0_i32 = arith.constant 0 : i32
    %c0_i32_0 = arith.constant 0 : i32
    %c0_i32_1 = arith.constant 0 : i32
    return %c0_i32, %c0_i32_0 : i32, i32
  }
  func.func @transform_2(%arg0: i32) -> (i32, i32) {
    %c0_i32 = arith.constant 0 : i32
    %c0_i32_0 = arith.constant 0 : i32
    %c0_i32_1 = arith.constant 0 : i32
    return %c0_i32, %c0_i32_0 : i32, i32
  }
  func.func @transform_3(%arg0: i32) -> (i32, i32) {
    %c0_i32 = arith.constant 0 : i32
    %c0_i32_0 = arith.constant 0 : i32
    %c0_i32_1 = arith.constant 0 : i32
    return %c0_i32, %c0_i32_0 : i32, i32
  }
  func.func @transform_4(%arg0: i32) -> (i32, i32) {
    %c0_i32 = arith.constant 0 : i32
    %c0_i32_0 = arith.constant 0 : i32
    %c0_i32_1 = arith.constant 0 : i32
    return %c0_i32, %c0_i32_0 : i32, i32
  }
  func.func @transform_5(%arg0: i32) -> (i32, i32) {
    %c0_i32 = arith.constant 0 : i32
    %c0_i32_0 = arith.constant 0 : i32
    return %arg0, %c0_i32 : i32, i32
  }
}

</mosaic_0001>

<bundles_post_ra>
// kernel: tpu_custom_call.1
= control target key start
LH: loop header
LB: loop body
LE: loop exit
PB: predicated region body
PF: predicated region fallthrough
CT: control target
= control target key end

     0   :  { %vm29_vm0 = vcmask 261120   ;;  %s284_s0 = inlined_call_operand.vmem [shape: f32[8,32], index: 0, kind: input, shape index: {}]   ;;  %s285_s1 = inlined_call_operand.vmem [shape: f32[1,32], index: 1, kind: input, shape index: {}]   ;;  %s286_s2 = inlined_call_operand.vmem [shape: f32[1,32], index: 2, kind: input, shape index: {}]   ;;  %s287_s3 = inlined_call_operand.vmem [shape: f32[32,8], index: 3, kind: input, shape index: {}]   ;;  %s288_s4 = inlined_call_operand.vmem [shape: f32[1,8], index: 4, kind: input, shape index: {}]   ;;  %s289_s5 = inlined_call_operand.hbm [shape: f32[8,8], index: 5, kind: output, shape index: {}]  }
   0x1   :  { %v21_v0 = vld [vmem:[%s284_s0] sm:$0xff] }
   0x2   :  { %10 = vsyncpa [#allocation3], 0  ;;  %v30_v1 = vsel %vm29_vm0, %v21_v0, 0.0  ;;  %v33_v2 = vmul.f32 %v21_v0, %v21_v0  ;;  %v24_v4 = vld [vmem:[%s287_s3] sm:$0xff]  ;;  %v25_v5 = vld [vmem:[%s287_s3 + $0x8] sm:$0xff]  ;;  %v211_v7 = vmov 0.0|0.0  }
   0x3   :  { %31 = vadd.xlane.f32.xlu0 %v30_v1  ;;  %v26_v6 = vld [vmem:[%s287_s3 + $0x10] sm:$0xff]  ;;  %175 = vmatprep.subr.bf16.mxu0 %v211_v7  ;;  %v176_v8 = vpack.c.bf16 %v25_v5, %v24_v4  ;;  %v27_v9 = vld [vmem:[%s287_s3 + $0x18] sm:$0xff]  ;;  %vm212_vm1 = vmmov 0   ;;  %v213_v10 = vmov 0.0   ;;  %v155_v22 = vld [vmem:[%s285_s1] ss:$0 sm:$0xff] }
   0x4   :  { %v34_v3 = vsel %vm29_vm0, %v33_v2, 0.0  ;;  %172 = vmatprep.mubr.msk.f32.mxu0 %vm212_vm1, %v213_v10  ;;  %v179_v11 = vpack.c.bf16 %v27_v9, %v26_v6  ;;  %v156_v24 = vld [vmem:[%s286_s2] ss:$0 sm:$0xff]  ;;  %s214_s7 = smov [#allocation2]   ;;  %vm139_vm2 = vcmask 64512  }
   0x5   :  { %177 = vmatpush3.bf16.msra.mxu0 %v176_v8  ;;  %v157_v27 = vld [vmem:[%s288_s4] ss:$0 sm:$0xff]  ;;  %s147_s8 = sshll.u32 %s214_s7, 4  ;;  %s148_s8 = int_to_ptr.vmem [resolvable:$true] %s147_s8 }
   0x6   :  { %178 = vmatprep.subr.bf16.mxu0 %v211_v7  ;;  %s187_s1 = scalar_lea.vmem %s148_s8, 128  ;;  %p192_p1 = scmp.lt.s32.totalorder %s148_s8, %s148_s8 }
   0x7   :  { %35 = vadd.xlane.f32.xlu0 %v34_v3  ;;  %p188_p0 = scmp.ne.s32.totalorder %s148_s8, %s187_s1  ;;  %p193_p2 = scmp.lt.s32.totalorder %s187_s1, %s187_s1 }
   0x9   :  { %180 = vmatpush3.bf16.msra.mxu0 %v179_v11  ;;  %p194_p3 = por %p193_p2, %p192_p1 }
   0xb   :  { %p195_p4 = pnand %p194_p3, %p188_p0 }
  0x90   :  { %v32_v12 = vpop.xlane.xlu0 %31 }
  0x91   :  { %v37_v13 = vmul.f32 0.03125, %v32_v12 }
  0x93   :  { %v39_v15 = vmul.f32 %v37_v13, %v37_v13  ;;  %v42_v20 = vsub.f32 %v21_v0, %v37_v13 }
  0x94   :  { %v36_v14 = vpop.xlane.xlu0 %35 }
  0x95   :  { %v38_v16 = vmul.f32 0.03125, %v36_v14 }
  0x97   :  { %v40_v17 = vsub.f32 %v38_v16, %v39_v15 }
  0x99   :  { %v41_v18 = vmax.f32 %v40_v17, 0.0 }
  0x9b   :  { %v43_v19 = vadd.f32 1e-05, %v41_v18 }
  0x9d   :  { %185 = vrsqrt.f32 %v43_v19 }
  0xa7   :  { %v186_v21 = vpop.eup %185 }
  0xa8   :  { %v45_v23 = vmul.f32 %v186_v21, %v42_v20 }
  0xaa   :  { %v52_v25 = vmul.f32 %v155_v22, %v45_v23 }
  0xac   :  { %v59_v26 = vadd.f32 %v156_v24, %v52_v25 }
  0xae   :  { %173 = vmatmul.mubr.msk.f32.vlgmr.msra.gmra.mrb[0].mxu0 %vm29_vm0, %v59_v26 }
 0x181   :  { %v135_v28 = vpop.f32.mrb[0].mxu0 }
 0x182   :  { %v136_v29 = vadd.f32 %v157_v27, %v135_v28  ;;  %v174_v30 = vpop.f32.mrb[1].mxu0 }
 0x184   :  { %140 = vst.msk [vmem:[#allocation2] sm:$0xff] %vm139_vm2, %v136_v29 }
 0x185   :  { %198 = shalt.err (!%p195_p4)
}
 0x186   :  { %s199_s10 = scalar_lea.hbm %s289_s5, 128 }
 0x187   :  { %p200_p5 = scmp.ne.s32.totalorder %s289_s5, %s199_s10  ;;  %p203_p6 = scmp.lt.u32.totalorder %s199_s10, %s289_s5 }
 0x189   :  { %p205_p7 = pnand %p203_p6, %p200_p5 }
 0x18b   :  { %208 = shalt.err (!%p205_p7)
}
 0x18c   :  { %150 = dma.vmem_to_hbm [thread:$0]  %s148_s8, 128, %s289_s5, [#allocation3]  }
 0x18d   :  { %209 = dma.done.wait [#allocation3], 128  }
 0x18e   :  { %210 = vsyncadd [#allocation3], 4294967168 }
 0x18f   :  { %154 = vsyncpa [#allocation3], 1 }

</bundles_post_ra>
